<compile_context>
chip_gen: v7x
topology: tpu7x:2x2x1
jax: 0.10.0
libtpu: 0.0.40
codegen_flags: <defaults>
</compile_context>

<pallas_src>
import jax
import jax.numpy as jnp
from jax.experimental import pallas as pl
from jax.experimental.pallas import tpu as pltpu


def _normalize_kernel(x_ref, sb_ref, o_ref):
    # x_ref:  (TILE_R, TILE_HW) input tile, native dtype
    # sb_ref: (TILE_R, 2) f32 -- column 0 = scale (1/std), column 1 = bias (-mean/std)
    # o_ref:  (TILE_R, TILE_HW) output tile, out_dtype
    x = x_ref[...].astype(jnp.float32)
    sb = sb_ref[...]
    scale = sb[:, 0:1]
    bias = sb[:, 1:2]
    o_ref[...] = (x * scale + bias).astype(o_ref.dtype)


def _pick_tile(total: int, unit: int, cap: int) -> int:
    """Pick a block extent along one axis.

    Returns either the full axis (always a legal block extent) when it fits
    under `cap`, or a unit-aligned extent <= cap.  Exact divisors of `total`
    are preferred (no ragged boundary block); otherwise the capped aligned
    extent is used and the caller's pl.cdiv grid handles the ragged edge.
    """
    if total <= cap:
        return total
    cap_aligned = max(unit, (cap // unit) * unit)
    t = cap_aligned
    while t >= unit:
        if total % t == 0:
            return t
        t -= unit
    return cap_aligned


def _fold_rows(NC: int, H: int, W: int, row_unit: int) -> int:
    """Factor K of H to fold into the row axis when NC can't fill sublanes."""
    if NC >= row_unit or H <= 1:
        return 1
    fallback = 1
    for K in range(2, H + 1):
        if H % K:
            continue
        if NC * K < row_unit:
            continue
        if ((H // K) * W) % 128 == 0:
            return K          # smallest K: fills sublanes AND lane-dense width
        if fallback == 1:
            fallback = K      # fills sublanes, width ragged (full-extent block)
    return fallback


def normalize(x: jax.Array, mean: jax.Array, std: jax.Array,
              out_dtype=None) -> jax.Array:
    """Per-channel normalization of an NCHW tensor, matching the PyTorch module."""
    assert x.ndim == 4, "expected NCHW input"
    N, C, H, W = x.shape
    NC, HW = N * C, H * W

    if out_dtype is None:
        # torch promotes x against the float32 mean/std parameters.
        out_dtype = jnp.result_type(x.dtype, jnp.float32)

    mean = jnp.asarray(mean, jnp.float32).reshape(-1)
    std = jnp.asarray(std, jnp.float32).reshape(-1)
    assert mean.shape[0] == C and std.shape[0] == C

    in_itemsize = jnp.dtype(x.dtype).itemsize
    out_itemsize = jnp.dtype(out_dtype).itemsize
    # dtype-aware sublane packing: f32 -> 8 rows/vreg, bf16 -> 16, int8 -> 32
    row_unit = 8 * max(1, 4 // max(in_itemsize, 1))

    # Fold H into the row axis if N*C alone can't fill the vreg sublanes.
    K = _fold_rows(NC, H, W, row_unit)
    R = NC * K
    HWK = HW // K

    # Layout-only reshape for contiguous NCHW input; keep native dtype.
    x2 = x.reshape(R, HWK)

    # Fused multiply-add parameters: one (scale, bias) pair per slab row,
    # packed into a single (R, 2) operand.  Row r -> channel (r // K) % C.
    scale_c = 1.0 / std
    bias_c = -mean * scale_c
    sb = jnp.stack([scale_c, bias_c], axis=-1)          # (C, 2)
    sb = jnp.tile(sb, (N, 1))                           # (N*C, 2)
    if K > 1:
        sb = jnp.repeat(sb, K, axis=0)                  # (R, 2)

    # Tile budget in BYTES (input tile + output tile for one grid step).
    TILE_BYTES = 8 * 1024 * 1024
    bytes_per_elem = in_itemsize + out_itemsize
    target_elems = max(row_unit * 128, TILE_BYTES // bytes_per_elem)

    # Lane-dense last dim; cap it so the row axis keeps granularity for
    # megacore sharding and ragged handling.
    hw_cap = max(128, min(target_elems // row_unit, 16384))
    TILE_HW = _pick_tile(HWK, 128, hw_cap)

    max_rows = max(row_unit, (target_elems // max(TILE_HW, 1)) // row_unit * row_unit)
    TILE_R = _pick_tile(R, row_unit, max_rows)

    grid = (pl.cdiv(R, TILE_R), pl.cdiv(HWK, TILE_HW))

    # Explicit VMEM cap: double-buffered in/out tiles + lane-padded sb tile
    # + headroom; clamped to 40 MiB (safe on v5e/v6e physical and under
    # v7x's 64 MiB physical VMEM).
    needed = (2 * TILE_R * TILE_HW * bytes_per_elem
              + 2 * TILE_R * 128 * 4
              + (4 << 20))
    vmem_limit = int(min(40 * 1024 * 1024, needed))

    out2 = pl.pallas_call(
        _normalize_kernel,
        out_shape=jax.ShapeDtypeStruct((R, HWK), out_dtype),
        grid=grid,
        in_specs=[
            pl.BlockSpec((TILE_R, TILE_HW), lambda i, j: (i, j)),  # x tile
            pl.BlockSpec((TILE_R, 2), lambda i, j: (i, 0)),        # scale|bias
        ],
        out_specs=pl.BlockSpec((TILE_R, TILE_HW), lambda i, j: (i, j)),
        compiler_params=pltpu.CompilerParams(
            dimension_semantics=("parallel", "parallel"),
            vmem_limit_bytes=vmem_limit,
        ),
    )(x2, sb)

    return out2.reshape(N, C, H, W)


if __name__ == "__main__":
    key = jax.random.PRNGKey(0)
    N, C, H, W = 2, 4, 16, 16

    # Deterministic parameters (Normalize.__init__: per-channel mean/std).
    mean = jnp.array([0.45, 0.45, 0.45, 0.45], dtype=jnp.float32)
    std = jnp.array([0.225, 0.225, 0.225, 0.225], dtype=jnp.float32)

    x = jax.random.uniform(key, (N, C, H, W), dtype=jnp.float32)

    out = normalize(x, mean, std)
    out = jax.block_until_ready(out)

    # Reference check against plain JAX broadcasting (same semantics as torch).
    ref = (x - mean.reshape(1, C, 1, 1)) / std.reshape(1, C, 1, 1)
    assert out.shape == (N, C, H, W)
    assert out.dtype == jnp.float32
    assert jnp.allclose(out, ref, atol=1e-5, rtol=1e-5)

    print("KERNEL_OK")
</pallas_src>

<mosaic_0001>
module attributes {stable_mosaic.version = 11 : i64} {
  func.func @_normalize_kernel(%arg0: i32, %arg1: i32, %arg2: memref<8x256xf32, #tpu.memory_space<vmem>>, %arg3: memref<8x2xf32, #tpu.memory_space<vmem>>, %arg4: memref<8x256xf32, #tpu.memory_space<vmem>>) attributes {dimension_semantics = [#tpu.dimension_semantics<parallel>, #tpu.dimension_semantics<parallel>], iteration_bounds = array<i64: 1, 1>, scalar_prefetch = 0 : i64, scratch_operands = 0 : i64, tpu.core_type = #tpu.core_type<tc>, window_params = [{transform_indices = @transform_0, window_bounds = array<i64: 8, 256>}, {transform_indices = @transform_1, window_bounds = array<i64: 8, 2>}, {transform_indices = @transform_2, window_bounds = array<i64: 8, 256>}]} {
    %c0 = arith.constant 0 : index
    %c0_0 = arith.constant 0 : index
    %0 = vector.load %arg2[%c0, %c0_0] : memref<8x256xf32, #tpu.memory_space<vmem>>, vector<8x256xf32>
    %c0_1 = arith.constant 0 : index
    %c0_2 = arith.constant 0 : index
    %1 = vector.load %arg3[%c0_1, %c0_2] : memref<8x2xf32, #tpu.memory_space<vmem>>, vector<8x2xf32>
    %2 = vector.extract_strided_slice %1 {offsets = [0, 0], sizes = [8, 1], strides = [1, 1]} : vector<8x2xf32> to vector<8x1xf32>
    %3 = vector.extract_strided_slice %1 {offsets = [0, 1], sizes = [8, 1], strides = [1, 1]} : vector<8x2xf32> to vector<8x1xf32>
    %4 = vector.broadcast %2 : vector<8x1xf32> to vector<8x256xf32>
    %5 = arith.mulf %0, %4 : vector<8x256xf32>
    %6 = vector.broadcast %3 : vector<8x1xf32> to vector<8x256xf32>
    %7 = arith.addf %5, %6 : vector<8x256xf32>
    %c0_3 = arith.constant 0 : index
    %c0_4 = arith.constant 0 : index
    %8 = vector.load %arg4[%c0_3, %c0_4] : memref<8x256xf32, #tpu.memory_space<vmem>>, vector<8x256xf32>
    tpu.vector_store %arg4[%c0_3, %c0_4], %7 {strides = array<i32>} : memref<8x256xf32, #tpu.memory_space<vmem>>, vector<8x256xf32>,
    return
  }
  func.func @transform_0(%arg0: i32, %arg1: i32) -> (i32, i32) {
    %c0_i32 = arith.constant 0 : i32
    return %arg0, %arg1 : i32, i32
  }
  func.func @transform_1(%arg0: i32, %arg1: i32) -> (i32, i32) {
    %c0_i32 = arith.constant 0 : i32
    %c0_i32_0 = arith.constant 0 : i32
    return %arg0, %c0_i32 : i32, i32
  }
  func.func @transform_2(%arg0: i32, %arg1: i32) -> (i32, i32) {
    %c0_i32 = arith.constant 0 : i32
    return %arg0, %arg1 : i32, i32
  }
}

</mosaic_0001>

<bundles_post_ra>
// kernel: tpu_custom_call.1
= control target key start
LH: loop header
LB: loop body
LE: loop exit
PB: predicated region body
PF: predicated region fallthrough
CT: control target
= control target key end

     0   :  { %7 = vsyncpa [#allocation3], 0  ;;  %s157_s0 = inlined_call_operand.hbm [shape: f32[8,256], index: 0, kind: input, shape index: {}]   ;;  %s158_s1 = inlined_call_operand.vmem [shape: f32[8,2], index: 1, kind: input, shape index: {}]   ;;  %s159_s2 = inlined_call_operand.hbm [shape: f32[8,256], index: 2, kind: output, shape index: {}]  }
   0x1   :  { %8 = vsyncpa [#allocation4], 0  ;;  %s111_s9 = smov [#allocation2]   ;;  %s63_s13 = scalar_lea.hbm %s157_s0, 256 }
   0x2   :  { %s15_s10 = sshll.u32 %s111_s9, 4  ;;  %p64_p0 = scmp.ne.s32.totalorder %s157_s0, %s63_s13  ;;  %s16_s10 = int_to_ptr.vmem [resolvable:$true] %s15_s10 }
   0x3   :  { %p67_p1 = scmp.lt.u32.totalorder %s63_s13, %s157_s0 }
   0x5   :  { %p69_p2 = pnand %p67_p1, %p64_p0 }
   0x7   :  { %72 = shalt.err (!%p69_p2)
}
   0x8   :  { %s73_s18 = scalar_lea.vmem %s16_s10, 256  ;;  %p78_p4 = scmp.lt.s32.totalorder %s16_s10, %s16_s10 }
   0x9   :  { %p74_p3 = scmp.ne.s32.totalorder %s16_s10, %s73_s18  ;;  %p79_p5 = scmp.lt.s32.totalorder %s73_s18, %s73_s18 }
   0xb   :  { %p80_p6 = por %p79_p5, %p78_p4 }
   0xd   :  { %p81_p7 = pnand %p80_p6, %p74_p3 }
   0xf   :  { %84 = shalt.err (!%p81_p7)
}
  0x10   :  { %18 = dma.hbm_to_vmem [thread:$0]  %s157_s0, 256, %s16_s10, [#allocation3]  }
  0x11   :  { %107 = dma.done.wait [#allocation3], 256  }
  0x12   :  { %108 = vsyncadd [#allocation3], 4294967040  ;;  %v112_v0 = vmov 0   ;;  %v26_v1 = vld [vmem:[%s158_s1] sm:$0xff]  ;;  %v113_v2 = vmov 1   ;;  %v25_v5 = vld [vmem:[#allocation2 + $0x8] sm:$0xff] }
  0x13   :  { %61 = vset.pattern.permute.xlu0 %v112_v0  ;;  %v24_v4 = vld [vmem:[#allocation2] sm:$0xff]  ;;  %s114_s23 = smov [#allocation5]  }
  0x14   :  { %29 = vperm.xlu0 %61, %v26_v1   ;;  %s48_s24 = sshll.u32 %s114_s23, 4  ;;  %s49_s24 = int_to_ptr.vmem [resolvable:$true] %s48_s24 }
  0x15   :  { %s85_s0 = scalar_lea.vmem %s49_s24, 256  ;;  %p90_p9 = scmp.lt.s32.totalorder %s49_s24, %s49_s24 }
  0x16   :  { %p86_p8 = scmp.ne.s32.totalorder %s49_s24, %s85_s0  ;;  %p91_p10 = scmp.lt.s32.totalorder %s85_s0, %s85_s0 }
  0x18   :  { %62 = vset.pattern.permute.xlu0 %v113_v2  ;;  %p92_p11 = por %p91_p10, %p90_p9 }
  0x19   :  { %35 = vperm.xlu0 %62, %v26_v1  }
  0x1a   :  { %p93_p12 = pnand %p92_p11, %p86_p8 }
  0x93   :  { %v30_v3 = vpop.permute.xlu0 %29 }
  0x94   :  { %v32_v6 = vmul.f32 %v30_v3, %v24_v4  ;;  %v33_v7 = vmul.f32 %v30_v3, %v25_v5 }
  0x98   :  { %v36_v8 = vpop.permute.xlu0 %35 }
  0x99   :  { %v38_v9 = vadd.f32 %v36_v8, %v32_v6  ;;  %v39_v10 = vadd.f32 %v36_v8, %v33_v7 }
  0x9b   :  { %40 = vst [vmem:[#allocation5] sm:$0xff] %v38_v9  ;;  %41 = vst [vmem:[#allocation5 + $0x8] sm:$0xff] %v39_v10 }
  0x9c   :  { %96 = shalt.err (!%p93_p12)
}
  0x9d   :  { %s97_s26 = scalar_lea.hbm %s159_s2, 256 }
  0x9e   :  { %p98_p13 = scmp.ne.s32.totalorder %s159_s2, %s97_s26  ;;  %p101_p0 = scmp.lt.u32.totalorder %s97_s26, %s159_s2 }
  0xa0   :  { %p103_p1 = pnand %p101_p0, %p98_p13 }
  0xa2   :  { %106 = shalt.err (!%p103_p1)
}
  0xa3   :  { %51 = dma.vmem_to_hbm [thread:$0]  %s49_s24, 256, %s159_s2, [#allocation4]  }
  0xa4   :  { %109 = dma.done.wait [#allocation4], 256  }
  0xa5   :  { %110 = vsyncadd [#allocation4], 4294967040 }
  0xa6   :  { %55 = vsyncpa [#allocation3], 1 }
  0xa7   :  { %56 = vsyncpa [#allocation4], 1 }

</bundles_post_ra>
